<compile_context>
chip_gen: v6e
topology: v6e:2x2x1
jax: 0.10.0
libtpu: 0.0.40
codegen_flags: <defaults>
</compile_context>

<pallas_src>
import jax
import jax.numpy as jnp
from jax.experimental import pallas as pl
from jax.experimental.pallas import tpu as pltpu

LANE = 128   # lane width (last dim alignment)
SUB = 8      # sublane width (second-to-last dim alignment)


def _round_up(x, m):
    return (x + m - 1) // m * m


# ----------------------------------------------------------------------------
# Kernel
# ----------------------------------------------------------------------------
def _make_kernel(compute_dtype):
    """Kernel factory: compute_dtype is the MXU input dtype (f32 or bf16)."""

    def actor_sac_fwd_kernel(x_ref, w_ref, b_ref, o_ref):
        # x_ref: (TM, D) compute_dtype   w_ref: (4, D, D) compute_dtype
        # b_ref: (4, 1, D) f32           o_ref: (TM, D) f32
        x = x_ref[...]

        # net__state: Linear -> ReLU -> Linear -> ReLU  (f32 accumulate / VPU)
        h = jnp.dot(x, w_ref[0], preferred_element_type=jnp.float32) + b_ref[0]
        h = jnp.maximum(h, 0.0)
        h = jnp.dot(h.astype(compute_dtype), w_ref[1],
                    preferred_element_type=jnp.float32) + b_ref[1]
        h = jnp.maximum(h, 0.0)

        # net_action: Linear -> Hardswish -> Linear
        z = jnp.dot(h.astype(compute_dtype), w_ref[2],
                    preferred_element_type=jnp.float32) + b_ref[2]
        z = z * jnp.clip(z + 3.0, 0.0, 6.0) * (1.0 / 6.0)   # Hardswish (f32 VPU)
        a = jnp.dot(z.astype(compute_dtype), w_ref[3],
                    preferred_element_type=jnp.float32) + b_ref[3]

        # Final tanh on the EUP; (TM, D) store is lane-dense (D % 128 == 0).
        o_ref[...] = jnp.tanh(a)

    return actor_sac_fwd_kernel


# ----------------------------------------------------------------------------
# Parameter packing: pad every layer to a common (D, D) and stack.
# ----------------------------------------------------------------------------
def pack_params(params, compute_dtype=jnp.float32):
    """params: dict of (in,out) weights / (1,out) biases (f32).
    Returns dict(w=(4,D,D) compute_dtype, b=(4,1,D) f32) with zero padding."""
    ws = [params["w1"], params["w2"], params["w3"], params["w4"]]
    bs = [params["b1"], params["b2"], params["b3"], params["b4"]]
    dims = set()
    for w in ws:
        dims.add(w.shape[0])
        dims.add(w.shape[1])
    D = max(_round_up(d, LANE) for d in dims)

    w_pack = jnp.zeros((4, D, D), compute_dtype)
    b_pack = jnp.zeros((4, 1, D), jnp.float32)
    for i, (w, b) in enumerate(zip(ws, bs)):
        w_pack = w_pack.at[i, : w.shape[0], : w.shape[1]].set(
            w.astype(compute_dtype))
        b_pack = b_pack.at[i, :, : b.shape[1]].set(b.astype(jnp.float32))
    return dict(w=w_pack, b=b_pack)


# ----------------------------------------------------------------------------
# Forward wrapper
# ----------------------------------------------------------------------------
def actor_sac_forward(state, packed, action_dim, *, tm=256):
    """state: (B, state_dim) f32. packed: output of pack_params."""
    B, state_dim = state.shape
    w, b = packed["w"], packed["b"]
    D = w.shape[-1]
    compute_dtype = w.dtype

    # Batch tile: multiple of 8 (sublane), capped at `tm`; pad batch to fit.
    TM = min(tm, _round_up(B, SUB))
    B_pad = _round_up(B, TM)

    # Zero-pad state into a lane-dense (B_pad, D) slab in the compute dtype.
    x = jnp.zeros((B_pad, D), compute_dtype)
    x = x.at[:B, :state_dim].set(state.astype(compute_dtype))

    grid = (B_pad // TM,)
    kernel = _make_kernel(compute_dtype)

    out = pl.pallas_call(
        kernel,
        out_shape=jax.ShapeDtypeStruct((B_pad, D), jnp.float32),
        grid_spec=pltpu.PrefetchScalarGridSpec(
            num_scalar_prefetch=0,
            grid=grid,
            in_specs=[
                pl.BlockSpec((TM, D), lambda i: (i, 0)),       # state tile
                pl.BlockSpec((4, D, D), lambda i: (0, 0, 0)),  # resident weights
                pl.BlockSpec((4, 1, D), lambda i: (0, 0, 0)),  # resident biases
            ],
            out_specs=pl.BlockSpec((TM, D), lambda i: (i, 0)),
        ),
        compiler_params=pltpu.CompilerParams(
            dimension_semantics=("parallel",)),  # shard batch across TCs (v7x)
    )(x, w, b)

    return out[:B, :action_dim]


# ----------------------------------------------------------------------------
# Synthetic params + pure-JAX reference
# ----------------------------------------------------------------------------
def init_params(key, state_dim, mid_dim, action_dim):
    """Deterministic synthetic parameters. Weights stored as (in, out)."""
    ks = jax.random.split(key, 8)

    def lin(kw, kb, fan_in, fan_out):
        bound = 1.0 / jnp.sqrt(fan_in)
        w = jax.random.uniform(kw, (fan_in, fan_out), jnp.float32, -bound, bound)
        bias = jax.random.uniform(kb, (1, fan_out), jnp.float32, -bound, bound)
        return w, bias

    w1, b1 = lin(ks[0], ks[1], state_dim, mid_dim)
    w2, b2 = lin(ks[2], ks[3], mid_dim, mid_dim)
    w3, b3 = lin(ks[4], ks[5], mid_dim, mid_dim)
    w4, b4 = lin(ks[6], ks[7], mid_dim, action_dim)
    return dict(w1=w1, b1=b1, w2=w2, b2=b2, w3=w3, b3=b3, w4=w4, b4=b4)


def actor_sac_forward_ref(state, p):
    h = jnp.maximum(state @ p["w1"] + p["b1"], 0.0)
    h = jnp.maximum(h @ p["w2"] + p["b2"], 0.0)
    z = h @ p["w3"] + p["b3"]
    z = z * jnp.clip(z + 3.0, 0.0, 6.0) * (1.0 / 6.0)
    return jnp.tanh(z @ p["w4"] + p["b4"])


if __name__ == "__main__":
    B, STATE_DIM, MID_DIM, ACTION_DIM = 8, 16, 32, 4

    key = jax.random.PRNGKey(0)
    k_state, k_params, k_state2 = jax.random.split(key, 3)
    state = jax.random.normal(k_state, (B, STATE_DIM), jnp.float32)
    params = init_params(k_params, STATE_DIM, MID_DIM, ACTION_DIM)
    ref = actor_sac_forward_ref(state, params)

    # f32 path (safe everywhere, incl. v5e).
    packed_f32 = pack_params(params, jnp.float32)
    out = jax.block_until_ready(actor_sac_forward(state, packed_f32, ACTION_DIM))
    assert out.shape == (B, ACTION_DIM)
    assert jnp.allclose(out, ref, atol=1e-5, rtol=1e-5)

    # bf16-weight MXU path (v6e/v7x): f32 accumulate, f32 elementwise.
    packed_bf16 = pack_params(params, jnp.bfloat16)
    out_bf16 = jax.block_until_ready(
        actor_sac_forward(state, packed_bf16, ACTION_DIM))
    assert out_bf16.shape == (B, ACTION_DIM)
    assert jnp.allclose(out_bf16, ref, atol=5e-2, rtol=5e-2)

    # Larger batch exercising the multi-step batch grid with resident weights.
    B2 = 200
    state2 = jax.random.normal(k_state2, (B2, STATE_DIM), jnp.float32)
    ref2 = actor_sac_forward_ref(state2, params)
    out2 = jax.block_until_ready(
        actor_sac_forward(state2, packed_f32, ACTION_DIM, tm=64))
    assert out2.shape == (B2, ACTION_DIM)
    assert jnp.allclose(out2, ref2, atol=1e-5, rtol=1e-5)

    # TODO(synk): get__a_noisy / get__a__log_prob (net__a_std + sampling paths)
    # are not part of forward(); they would need pltpu.prng_* for in-kernel
    # noise and would make the single EUP slot (exp/log/tanh) the binding unit.
    print("KERNEL_OK")
</pallas_src>

<mosaic_0001>
module attributes {stable_mosaic.version = 11 : i64} {
  func.func @actor_sac_fwd_kernel(%arg0: i32, %arg1: memref<8x128xf32, #tpu.memory_space<vmem>>, %arg2: memref<4x128x128xf32, #tpu.memory_space<vmem>>, %arg3: memref<4x1x128xf32, #tpu.memory_space<vmem>>, %arg4: memref<8x128xf32, #tpu.memory_space<vmem>>) attributes {dimension_semantics = [#tpu.dimension_semantics<parallel>], iteration_bounds = array<i64: 1>, scalar_prefetch = 0 : i64, scratch_operands = 0 : i64, tpu.core_type = #tpu.core_type<tc>, window_params = [{transform_indices = @transform_0, window_bounds = array<i64: 8, 128>}, {pipeline_mode = #tpu.pipeline_mode<synchronous>, transform_indices = @transform_1, window_bounds = array<i64: 4, 128, 128>}, {pipeline_mode = #tpu.pipeline_mode<synchronous>, transform_indices = @transform_2, window_bounds = array<i64: 4, 1, 128>}, {transform_indices = @transform_3, window_bounds = array<i64: 8, 128>}]} {
    %c0 = arith.constant 0 : index
    %c0_0 = arith.constant 0 : index
    %0 = vector.load %arg1[%c0, %c0_0] : memref<8x128xf32, #tpu.memory_space<vmem>>, vector<8x128xf32>
    %c0_1 = arith.constant 0 : index
    %c0_2 = arith.constant 0 : index
    %c0_3 = arith.constant 0 : index
    %1 = vector.load %arg2[%c0_1, %c0_2, %c0_3] : memref<4x128x128xf32, #tpu.memory_space<vmem>>, vector<1x128x128xf32>
    %2 = vector.shape_cast %1 : vector<1x128x128xf32> to vector<128x128xf32>
    %cst = arith.constant dense<0.000000e+00> : vector<8x128xf32>
    %3 = tpu.matmul %0, %2, %cst {dimension_numbers = #tpu.dot_dimension_numbers<[1], [0], [0], [1], [0, 0, 1, 1], [], []>} : vector<8x128xf32>, vector<128x128xf32>, vector<8x128xf32> -> vector<8x128xf32>
    %c0_4 = arith.constant 0 : index
    %c0_5 = arith.constant 0 : index
    %c0_6 = arith.constant 0 : index
    %4 = vector.load %arg3[%c0_4, %c0_5, %c0_6] : memref<4x1x128xf32, #tpu.memory_space<vmem>>, vector<1x1x128xf32>
    %5 = vector.shape_cast %4 : vector<1x1x128xf32> to vector<1x128xf32>
    %6 = vector.broadcast %5 : vector<1x128xf32> to vector<8x128xf32>
    %7 = arith.addf %3, %6 : vector<8x128xf32>
    %cst_7 = arith.constant 0.000000e+00 : f32
    %8 = vector.broadcast %cst_7 : f32 to vector<8x128xf32>
    %9 = arith.maximumf %7, %8 : vector<8x128xf32>
    %c1 = arith.constant 1 : index
    %c0_8 = arith.constant 0 : index
    %c0_9 = arith.constant 0 : index
    %10 = vector.load %arg2[%c1, %c0_8, %c0_9] : memref<4x128x128xf32, #tpu.memory_space<vmem>>, vector<1x128x128xf32>
    %11 = vector.shape_cast %10 : vector<1x128x128xf32> to vector<128x128xf32>
    %cst_10 = arith.constant dense<0.000000e+00> : vector<8x128xf32>
    %12 = tpu.matmul %9, %11, %cst_10 {dimension_numbers = #tpu.dot_dimension_numbers<[1], [0], [0], [1], [0, 0, 1, 1], [], []>} : vector<8x128xf32>, vector<128x128xf32>, vector<8x128xf32> -> vector<8x128xf32>
    %c1_11 = arith.constant 1 : index
    %c0_12 = arith.constant 0 : index
    %c0_13 = arith.constant 0 : index
    %13 = vector.load %arg3[%c1_11, %c0_12, %c0_13] : memref<4x1x128xf32, #tpu.memory_space<vmem>>, vector<1x1x128xf32>
    %14 = vector.shape_cast %13 : vector<1x1x128xf32> to vector<1x128xf32>
    %15 = vector.broadcast %14 : vector<1x128xf32> to vector<8x128xf32>
    %16 = arith.addf %12, %15 : vector<8x128xf32>
    %cst_14 = arith.constant 0.000000e+00 : f32
    %17 = vector.broadcast %cst_14 : f32 to vector<8x128xf32>
    %18 = arith.maximumf %16, %17 : vector<8x128xf32>
    %c2 = arith.constant 2 : index
    %c0_15 = arith.constant 0 : index
    %c0_16 = arith.constant 0 : index
    %19 = vector.load %arg2[%c2, %c0_15, %c0_16] : memref<4x128x128xf32, #tpu.memory_space<vmem>>, vector<1x128x128xf32>
    %20 = vector.shape_cast %19 : vector<1x128x128xf32> to vector<128x128xf32>
    %cst_17 = arith.constant dense<0.000000e+00> : vector<8x128xf32>
    %21 = tpu.matmul %18, %20, %cst_17 {dimension_numbers = #tpu.dot_dimension_numbers<[1], [0], [0], [1], [0, 0, 1, 1], [], []>} : vector<8x128xf32>, vector<128x128xf32>, vector<8x128xf32> -> vector<8x128xf32>
    %c2_18 = arith.constant 2 : index
    %c0_19 = arith.constant 0 : index
    %c0_20 = arith.constant 0 : index
    %22 = vector.load %arg3[%c2_18, %c0_19, %c0_20] : memref<4x1x128xf32, #tpu.memory_space<vmem>>, vector<1x1x128xf32>
    %23 = vector.shape_cast %22 : vector<1x1x128xf32> to vector<1x128xf32>
    %24 = vector.broadcast %23 : vector<1x128xf32> to vector<8x128xf32>
    %25 = arith.addf %21, %24 : vector<8x128xf32>
    %cst_21 = arith.constant 3.000000e+00 : f32
    %26 = vector.broadcast %cst_21 : f32 to vector<8x128xf32>
    %27 = arith.addf %25, %26 : vector<8x128xf32>
    %cst_22 = arith.constant 0.000000e+00 : f32
    %cst_23 = arith.constant 6.000000e+00 : f32
    %28 = vector.broadcast %cst_22 : f32 to vector<8x128xf32>
    %29 = arith.maximumf %28, %27 : vector<8x128xf32>
    %30 = vector.broadcast %cst_23 : f32 to vector<8x128xf32>
    %31 = arith.minimumf %30, %29 : vector<8x128xf32>
    %32 = arith.mulf %25, %31 : vector<8x128xf32>
    %cst_24 = arith.constant 0.166666672 : f32
    %33 = vector.broadcast %cst_24 : f32 to vector<8x128xf32>
    %34 = arith.mulf %32, %33 : vector<8x128xf32>
    %c3 = arith.constant 3 : index
    %c0_25 = arith.constant 0 : index
    %c0_26 = arith.constant 0 : index
    %35 = vector.load %arg2[%c3, %c0_25, %c0_26] : memref<4x128x128xf32, #tpu.memory_space<vmem>>, vector<1x128x128xf32>
    %36 = vector.shape_cast %35 : vector<1x128x128xf32> to vector<128x128xf32>
    %cst_27 = arith.constant dense<0.000000e+00> : vector<8x128xf32>
    %37 = tpu.matmul %34, %36, %cst_27 {dimension_numbers = #tpu.dot_dimension_numbers<[1], [0], [0], [1], [0, 0, 1, 1], [], []>} : vector<8x128xf32>, vector<128x128xf32>, vector<8x128xf32> -> vector<8x128xf32>
    %c3_28 = arith.constant 3 : index
    %c0_29 = arith.constant 0 : index
    %c0_30 = arith.constant 0 : index
    %38 = vector.load %arg3[%c3_28, %c0_29, %c0_30] : memref<4x1x128xf32, #tpu.memory_space<vmem>>, vector<1x1x128xf32>
    %39 = vector.shape_cast %38 : vector<1x1x128xf32> to vector<1x128xf32>
    %40 = vector.broadcast %39 : vector<1x128xf32> to vector<8x128xf32>
    %41 = arith.addf %37, %40 : vector<8x128xf32>
    %42 = math.tanh %41 : vector<8x128xf32>
    %c0_31 = arith.constant 0 : index
    %c0_32 = arith.constant 0 : index
    %43 = vector.load %arg4[%c0_31, %c0_32] : memref<8x128xf32, #tpu.memory_space<vmem>>, vector<8x128xf32>
    tpu.vector_store %arg4[%c0_31, %c0_32], %42 {strides = array<i32>} : memref<8x128xf32, #tpu.memory_space<vmem>>, vector<8x128xf32>,
    return
  }
  func.func @transform_0(%arg0: i32) -> (i32, i32) {
    %c0_i32 = arith.constant 0 : i32
    %c0_i32_0 = arith.constant 0 : i32
    return %arg0, %c0_i32 : i32, i32
  }
  func.func @transform_1(%arg0: i32) -> (i32, i32, i32) {
    %c0_i32 = arith.constant 0 : i32
    %c0_i32_0 = arith.constant 0 : i32
    %c0_i32_1 = arith.constant 0 : i32
    %c0_i32_2 = arith.constant 0 : i32
    return %c0_i32, %c0_i32_0, %c0_i32_1 : i32, i32, i32
  }
  func.func @transform_2(%arg0: i32) -> (i32, i32, i32) {
    %c0_i32 = arith.constant 0 : i32
    %c0_i32_0 = arith.constant 0 : i32
    %c0_i32_1 = arith.constant 0 : i32
    %c0_i32_2 = arith.constant 0 : i32
    return %c0_i32, %c0_i32_0, %c0_i32_1 : i32, i32, i32
  }
  func.func @transform_3(%arg0: i32) -> (i32, i32) {
    %c0_i32 = arith.constant 0 : i32
    %c0_i32_0 = arith.constant 0 : i32
    return %arg0, %c0_i32 : i32, i32
  }
}

</mosaic_0001>

<bundles_post_ra>
// kernel: tpu_custom_call.1
= control target key start
LH: loop header
LB: loop body
LE: loop exit
PB: predicated region body
PF: predicated region fallthrough
CT: control target
= control target key end

     0   :  { %8 = vsyncpa [#allocation3], 0  ;;  %s882_s0 = inlined_call_operand.hbm [shape: f32[8,128], index: 0, kind: input, shape index: {}]   ;;  %s883_s1 = inlined_call_operand.hbm [shape: f32[4,128,128], index: 1, kind: input, shape index: {}]   ;;  %s884_s2 = inlined_call_operand.hbm [shape: f32[4,1,128], index: 2, kind: input, shape index: {}]   ;;  %s885_s3 = inlined_call_operand.hbm [shape: f32[8,128], index: 3, kind: output, shape index: {}]  }
   0x1   :  { %9 = vsyncpa [#allocation6], 0 }
   0x2   :  { %10 = vsyncpa [#allocation4], 0  ;;  %s768_s12 = smov [#allocation5]  }
   0x3   :  { %s26_s13 = sshll.u32 %s768_s12, 4  ;;  %s27_s13 = int_to_ptr.vmem [resolvable:$true] %s26_s13 }
   0x4   :  { %s690_s14 = scalar_lea.vmem %s27_s13, 8192  ;;  %p695_p1 = scmp.lt.s32.totalorder %s27_s13, %s27_s13 }
   0x5   :  { %p691_p0 = scmp.ne.s32.totalorder %s27_s13, %s690_s14  ;;  %p696_p2 = scmp.lt.s32.totalorder %s690_s14, %s690_s14 }
   0x7   :  { %p697_p3 = por %p696_p2, %p695_p1 }
   0x9   :  { %p698_p4 = pnand %p697_p3, %p691_p0 }
   0xb   :  { %701 = shalt.err (!%p698_p4)
}
   0xc   :  { %s769_s15 = smov 128   ;;  %s770_s16 = smov 8  }
   0xd   :  { %32 = dma.hbm_to_vmem [thread:$0]  %s883_s1, 8192, %s27_s13, [#allocation6], %s769_s15, %s769_s15, %s770_s16  }
   0xe   :  { %s771_s19 = smov [#allocation2]   ;;  %s772_s21 = smov [#allocation7]  }
   0xf   :  { %s17_s20 = sshll.u32 %s771_s19, 4  ;;  %s38_s22 = sshll.u32 %s772_s21, 4  ;;  %s18_s20 = int_to_ptr.vmem [resolvable:$true] %s17_s20  ;;  %s39_s22 = int_to_ptr.vmem [resolvable:$true] %s38_s22 }
  0x10   :  { %s710_s23 = scalar_lea.vmem %s18_s20, 128  ;;  %p715_p6 = scmp.lt.s32.totalorder %s18_s20, %s18_s20 }
  0x11   :  { %p711_p5 = scmp.ne.s32.totalorder %s18_s20, %s710_s23  ;;  %p716_p7 = scmp.lt.s32.totalorder %s710_s23, %s710_s23 }
  0x13   :  { %p717_p8 = por %p716_p7, %p715_p6 }
  0x15   :  { %p718_p9 = pnand %p717_p8, %p711_p5 }
  0x17   :  { %721 = shalt.err (!%p718_p9)
}
  0x18   :  { %20 = dma.hbm_to_vmem [thread:$0]  %s882_s0, 128, %s18_s20, [#allocation3]  }
  0x19   :  { %s730_s26 = scalar_lea.vmem %s39_s22, 64  ;;  %p735_p11 = scmp.lt.s32.totalorder %s39_s22, %s39_s22 }
  0x1a   :  { %p731_p10 = scmp.ne.s32.totalorder %s39_s22, %s730_s26  ;;  %p736_p12 = scmp.lt.s32.totalorder %s730_s26, %s730_s26 }
  0x1c   :  { %p737_p13 = por %p736_p12, %p735_p11 }
  0x1e   :  { %p738_p0 = pnand %p737_p13, %p731_p10 }
  0x20   :  { %741 = shalt.err (!%p738_p0)
}
  0x21   :  { %s773_s1 = smov 16   ;;  %s774_s27 = smov 1  }
  0x22   :  { %44 = dma.hbm_to_vmem [thread:$0]  %s884_s2, 64, %s39_s22, [#allocation6], %s773_s1, %s773_s1, %s774_s27  }
  0x23   :  { %762 = dma.done.wait [#allocation3], 128  }
  0x24   :  { %763 = vsyncadd [#allocation3], 4294967168 }
  0x25   :  { %764 = dma.done.wait [#allocation6], 8256  }
  0x26   :  { %765 = vsyncadd [#allocation6], 4294959040  ;;  %v775_v0 = vmov 0.0   ;;  %vm776_vm0 = vmmov 0   ;;  %v70_v1 = vld [vmem:[#allocation5 + $0x78] sm:$0xff]  ;;  %v69_v2 = vld [vmem:[#allocation5 + $0x70] sm:$0xff] }
  0x27   :  { %530 = vmatprep.subr.mxu0 %v775_v0  ;;  %562 = vmatprep.mubr.msk.f32.mxu0 %vm776_vm0, %v775_v0  ;;  %v68_v3 = vld [vmem:[#allocation5 + $0x68] sm:$0xff]  ;;  %v67_v4 = vld [vmem:[#allocation5 + $0x60] sm:$0xff]  ;;  %v165_v5 = vld [vmem:[#allocation5 + $0xf8] sm:$0xff]  ;;  %s777_s0 = smov [#allocation8]  }
  0x28   :  { %565 = vmatprep.subr.mxu1 %v775_v0  ;;  %597 = vmatprep.mubr.msk.f32.mxu1 %vm776_vm0, %v775_v0  ;;  %v66_v6 = vld [vmem:[#allocation5 + $0x58] sm:$0xff]  ;;  %v164_v7 = vld [vmem:[#allocation5 + $0xf0] sm:$0xff]  ;;  %v163_v8 = vld [vmem:[#allocation5 + $0xe8] sm:$0xff]  ;;  %s448_s2 = sshll.u32 %s777_s0, 4  ;;  %s449_s2 = int_to_ptr.vmem [resolvable:$true] %s448_s2 }
  0x29   :  { %531 = vmatpush3.msra.mxu0 %v70_v1  ;;  %566 = vmatpush3.msra.mxu1 %v165_v5  ;;  %v65_v9 = vld [vmem:[#allocation5 + $0x50] sm:$0xff]  ;;  %v162_v10 = vld [vmem:[#allocation5 + $0xe0] sm:$0xff]  ;;  %v64_v11 = vld [vmem:[#allocation5 + $0x48] sm:$0xff]  ;;  %s742_s30 = scalar_lea.vmem %s449_s2, 128  ;;  %p747_p2 = scmp.lt.s32.totalorder %s449_s2, %s449_s2 }
  0x2a   :  { %532 = vmatprep.subr.mxu0 %v775_v0  ;;  %567 = vmatprep.subr.mxu1 %v775_v0  ;;  %v161_v12 = vld [vmem:[#allocation5 + $0xd8] sm:$0xff]  ;;  %v63_v13 = vld [vmem:[#allocation5 + $0x40] sm:$0xff]  ;;  %v160_v14 = vld [vmem:[#allocation5 + $0xd0] sm:$0xff]  ;;  %p743_p1 = scmp.ne.s32.totalorder %s449_s2, %s742_s30  ;;  %p748_p3 = scmp.lt.s32.totalorder %s742_s30, %s742_s30 }
  0x2b   :  { %533 = vmatpush3.msra.mxu0 %v69_v2  ;;  %568 = vmatpush3.msra.mxu1 %v164_v7  ;;  %v62_v15 = vld [vmem:[#allocation5 + $0x38] sm:$0xff]  ;;  %v159_v16 = vld [vmem:[#allocation5 + $0xc8] sm:$0xff]  ;;  %v61_v17 = vld [vmem:[#allocation5 + $0x30] sm:$0xff] }
  0x2c   :  { %534 = vmatprep.subr.mxu0 %v775_v0  ;;  %569 = vmatprep.subr.mxu1 %v775_v0  ;;  %v158_v18 = vld [vmem:[#allocation5 + $0xc0] sm:$0xff]  ;;  %v60_v19 = vld [vmem:[#allocation5 + $0x28] sm:$0xff]  ;;  %v157_v20 = vld [vmem:[#allocation5 + $0xb8] sm:$0xff]  ;;  %p749_p4 = por %p748_p3, %p747_p2 }
  0x2d   :  { %535 = vmatpush3.msra.mxu0 %v68_v3  ;;  %570 = vmatpush3.msra.mxu1 %v163_v8  ;;  %v59_v21 = vld [vmem:[#allocation5 + $0x20] sm:$0xff]  ;;  %v156_v22 = vld [vmem:[#allocation5 + $0xb0] sm:$0xff]  ;;  %v58_v23 = vld [vmem:[#allocation5 + $0x18] sm:$0xff] }
  0x2e   :  { %536 = vmatprep.subr.mxu0 %v775_v0  ;;  %571 = vmatprep.subr.mxu1 %v775_v0  ;;  %v155_v24 = vld [vmem:[#allocation5 + $0xa8] sm:$0xff]  ;;  %v57_v25 = vld [vmem:[#allocation5 + $0x10] sm:$0xff]  ;;  %v154_v26 = vld [vmem:[#allocation5 + $0xa0] sm:$0xff]  ;;  %p750_p5 = pnand %p749_p4, %p743_p1 }
  0x2f   :  { %537 = vmatpush3.msra.mxu0 %v67_v4  ;;  %572 = vmatpush3.msra.mxu1 %v162_v10  ;;  %v56_v27 = vld [vmem:[#allocation5 + $0x8] sm:$0xff]  ;;  %v153_v28 = vld [vmem:[#allocation5 + $0x98] sm:$0xff]  ;;  %v55_v29 = vld [vmem:[#allocation5] sm:$0xff] }
  0x30   :  { %538 = vmatprep.subr.mxu0 %v775_v0  ;;  %573 = vmatprep.subr.mxu1 %v775_v0  ;;  %v54_v30 = vld [vmem:[#allocation2] sm:$0xff]  ;;  %v152_v31 = vld [vmem:[#allocation5 + $0x90] sm:$0xff]  ;;  %v151_v32 = vld [vmem:[#allocation5 + $0x88] sm:$0xff] }
  0x31   :  { %539 = vmatpush3.msra.mxu0 %v66_v6  ;;  %574 = vmatpush3.msra.mxu1 %v161_v12  ;;  %v150_v33 = vld [vmem:[#allocation5 + $0x80] sm:$0xff]  ;;  %v261_v34 = vld [vmem:[#allocation5 + $0x178] sm:$0xff]  ;;  %v260_v35 = vld [vmem:[#allocation5 + $0x170] sm:$0xff] }
  0x32   :  { %540 = vmatprep.subr.mxu0 %v775_v0  ;;  %575 = vmatprep.subr.mxu1 %v775_v0  ;;  %v259_v36 = vld [vmem:[#allocation5 + $0x168] sm:$0xff]  ;;  %v258_v37 = vld [vmem:[#allocation5 + $0x160] sm:$0xff]  ;;  %v257_v38 = vld [vmem:[#allocation5 + $0x158] sm:$0xff] }
  0x33   :  { %541 = vmatpush3.msra.mxu0 %v65_v9  ;;  %576 = vmatpush3.msra.mxu1 %v160_v14  ;;  %v256_v39 = vld [vmem:[#allocation5 + $0x150] sm:$0xff]  ;;  %v255_v40 = vld [vmem:[#allocation5 + $0x148] sm:$0xff]  ;;  %v254_v41 = vld [vmem:[#allocation5 + $0x140] sm:$0xff] }
  0x34   :  { %542 = vmatprep.subr.mxu0 %v775_v0  ;;  %577 = vmatprep.subr.mxu1 %v775_v0  ;;  %v253_v42 = vld [vmem:[#allocation5 + $0x138] sm:$0xff]  ;;  %v252_v43 = vld [vmem:[#allocation5 + $0x130] sm:$0xff]  ;;  %v251_v44 = vld [vmem:[#allocation5 + $0x128] sm:$0xff] }
  0x35   :  { %543 = vmatpush3.msra.mxu0 %v64_v11  ;;  %578 = vmatpush3.msra.mxu1 %v159_v16  ;;  %v250_v45 = vld [vmem:[#allocation5 + $0x120] sm:$0xff]  ;;  %v249_v46 = vld [vmem:[#allocation5 + $0x118] sm:$0xff]  ;;  %v248_v52 = vld [vmem:[#allocation5 + $0x110] sm:$0xff] }
  0x36   :  { %544 = vmatprep.subr.mxu0 %v775_v0  ;;  %579 = vmatprep.subr.mxu1 %v775_v0  ;;  %v458_v47 = vld [vmem:[#allocation7] ss:$0 sm:$0xff]  ;;  %v247_v53 = vld [vmem:[#allocation5 + $0x108] sm:$0xff]  ;;  %v361_v55 = vld [vmem:[#allocation5 + $0x1f8] sm:$0xff] }
  0x37   :  { %545 = vmatpush3.msra.mxu0 %v63_v13  ;;  %580 = vmatpush3.msra.mxu1 %v158_v18  ;;  %v246_v54 = vld [vmem:[#allocation5 + $0x100] sm:$0xff]  ;;  %v360_v56 = vld [vmem:[#allocation5 + $0x1f0] sm:$0xff]  ;;  %v359_v57 = vld [vmem:[#allocation5 + $0x1e8] sm:$0xff] }
  0x38   :  { %546 = vmatprep.subr.mxu0 %v775_v0  ;;  %581 = vmatprep.subr.mxu1 %v775_v0  ;;  %v358_v58 = vld [vmem:[#allocation5 + $0x1e0] sm:$0xff]  ;;  %v357_v59 = vld [vmem:[#allocation5 + $0x1d8] sm:$0xff]  ;;  %v356_v60 = vld [vmem:[#allocation5 + $0x1d0] sm:$0xff] }
  0x39   :  { %547 = vmatpush3.msra.mxu0 %v62_v15  ;;  %582 = vmatpush3.msra.mxu1 %v157_v20  ;;  %v355_v61 = vld [vmem:[#allocation5 + $0x1c8] sm:$0xff]  ;;  %v354_v62 = vld [vmem:[#allocation5 + $0x1c0] sm:$0xff]  ;;  %v353_v63 = vld [vmem:[#allocation5 + $0x1b8] sm:$0xff] }
  0x3a   :  { %548 = vmatprep.subr.mxu0 %v775_v0  ;;  %583 = vmatprep.subr.mxu1 %v775_v0  ;;  %v459_v1 = vld [vmem:[#allocation7 + $0x1] ss:$0 sm:$0xff]  ;;  %v352_v6 = vld [vmem:[#allocation5 + $0x1b0] sm:$0xff]  ;;  %v351_v7 = vld [vmem:[#allocation5 + $0x1a8] sm:$0xff] }
  0x3b   :  { %549 = vmatpush3.msra.mxu0 %v61_v17  ;;  %584 = vmatpush3.msra.mxu1 %v156_v22  ;;  %v350_v8 = vld [vmem:[#allocation5 + $0x1a0] sm:$0xff]  ;;  %v349_v9 = vld [vmem:[#allocation5 + $0x198] sm:$0xff]  ;;  %v348_v10 = vld [vmem:[#allocation5 + $0x190] sm:$0xff] }
  0x3c   :  { %550 = vmatprep.subr.mxu0 %v775_v0  ;;  %585 = vmatprep.subr.mxu1 %v775_v0  ;;  %v347_v11 = vld [vmem:[#allocation5 + $0x188] sm:$0xff]  ;;  %v346_v12 = vld [vmem:[#allocation5 + $0x180] sm:$0xff] }
  0x3d   :  { %551 = vmatpush3.msra.mxu0 %v60_v19  ;;  %586 = vmatpush3.msra.mxu1 %v155_v24  ;;  %v460_v13 = vld [vmem:[#allocation7 + $0x2] ss:$0 sm:$0xff]  ;;  %v461_v22 = vld [vmem:[#allocation7 + $0x3] ss:$0 sm:$0xff] }
  0x3e   :  { %552 = vmatprep.subr.mxu0 %v775_v0  ;;  %587 = vmatprep.subr.mxu1 %v775_v0 }
  0x3f   :  { %553 = vmatpush3.msra.mxu0 %v59_v21  ;;  %588 = vmatpush3.msra.mxu1 %v154_v26 }
  0x40   :  { %554 = vmatprep.subr.mxu0 %v775_v0  ;;  %589 = vmatprep.subr.mxu1 %v775_v0 }
  0x41   :  { %555 = vmatpush3.msra.mxu0 %v58_v23  ;;  %590 = vmatpush3.msra.mxu1 %v153_v28 }
  0x42   :  { %556 = vmatprep.subr.mxu0 %v775_v0  ;;  %591 = vmatprep.subr.mxu1 %v775_v0 }
  0x43   :  { %557 = vmatpush3.msra.mxu0 %v57_v25  ;;  %592 = vmatpush3.msra.mxu1 %v152_v31 }
  0x44   :  { %558 = vmatprep.subr.mxu0 %v775_v0  ;;  %593 = vmatprep.subr.mxu1 %v775_v0 }
  0x45   :  { %559 = vmatpush3.msra.mxu0 %v56_v27  ;;  %594 = vmatpush3.msra.mxu1 %v151_v32 }
  0x46   :  { %560 = vmatprep.subr.mxu0 %v775_v0  ;;  %595 = vmatprep.subr.mxu1 %v775_v0 }
  0x47   :  { %561 = vmatpush3.msra.mxu0 %v55_v29  ;;  %596 = vmatpush3.msra.mxu1 %v150_v33 }
  0x48   :  { %563 = vmatmul.mubr.f32.vlgmr.msra.gmra.mxu0 %v54_v30  ;;  %600 = vmatprep.subr.mxu0 %v775_v0 }
  0x49   :  { %632 = vmatprep.mubr.msk.f32.mxu0 %vm776_vm0, %v775_v0  ;;  %635 = vmatprep.subr.mxu1 %v775_v0 }
  0x4a   :  { %601 = vmatpush3.msra.mxu0 %v261_v34 }
  0x4b   :  { %602 = vmatprep.subr.mxu0 %v775_v0 }
  0x4c   :  { %603 = vmatpush3.msra.mxu0 %v260_v35 }
  0x4d   :  { %604 = vmatprep.subr.mxu0 %v775_v0 }
  0x4e   :  { %605 = vmatpush3.msra.mxu0 %v259_v36 }
  0x4f   :  { %606 = vmatprep.subr.mxu0 %v775_v0 }
  0x50   :  { %607 = vmatpush3.msra.mxu0 %v258_v37 }
  0x51   :  { %608 = vmatprep.subr.mxu0 %v775_v0 }
  0x52   :  { %609 = vmatpush3.msra.mxu0 %v257_v38 }
  0x53   :  { %610 = vmatprep.subr.mxu0 %v775_v0 }
  0x54   :  { %611 = vmatpush3.msra.mxu0 %v256_v39 }
  0x55   :  { %612 = vmatprep.subr.mxu0 %v775_v0 }
  0x56   :  { %613 = vmatpush3.msra.mxu0 %v255_v40 }
  0x57   :  { %614 = vmatprep.subr.mxu0 %v775_v0 }
  0x58   :  { %615 = vmatpush3.msra.mxu0 %v254_v41 }
  0x59   :  { %616 = vmatprep.subr.mxu0 %v775_v0 }
  0x5a   :  { %617 = vmatpush3.msra.mxu0 %v253_v42 }
  0x5b   :  { %618 = vmatprep.subr.mxu0 %v775_v0 }
  0x5c   :  { %619 = vmatpush3.msra.mxu0 %v252_v43 }
  0x5d   :  { %620 = vmatprep.subr.mxu0 %v775_v0 }
  0x5e   :  { %621 = vmatpush3.msra.mxu0 %v251_v44 }
  0x5f   :  { %622 = vmatprep.subr.mxu0 %v775_v0 }
  0x60   :  { %623 = vmatpush3.msra.mxu0 %v250_v45 }
  0x61   :  { %624 = vmatprep.subr.mxu0 %v775_v0 }
  0x62   :  { %625 = vmatpush3.msra.mxu0 %v249_v46 }
  0x63   :  { %626 = vmatprep.subr.mxu0 %v775_v0 }
  0x64   :  { %627 = vmatpush3.msra.mxu0 %v248_v52 }
  0x65   :  { %628 = vmatprep.subr.mxu0 %v775_v0 }
  0x66   :  { %629 = vmatpush3.msra.mxu0 %v247_v53 }
  0x67   :  { %630 = vmatprep.subr.mxu0 %v775_v0 }
  0x68   :  { %631 = vmatpush3.msra.mxu0 %v246_v54 }
 0x108   :  { %v144_v48 = vpop.f32.mrf.mxu0 }
 0x109   :  { %v145_v49 = vadd.f32 %v458_v47, %v144_v48 }
 0x10a   :  { %v564_v50 = vpop.f32.mrf.mxu0 }
 0x10b   :  { %v148_v51 = vmax.f32 %v145_v49, 0.0 }
 0x10d   :  { %598 = vmatmul.mubr.f32.vlgmr.msra.gmra.mxu1 %v148_v51 }
 0x10e   :  { %667 = vmatprep.mubr.msk.f32.mxu1 %vm776_vm0, %v775_v0  ;;  %636 = vmatpush3.msra.mxu1 %v361_v55 }
 0x10f   :  { %637 = vmatprep.subr.mxu1 %v775_v0 }
 0x110   :  { %638 = vmatpush3.msra.mxu1 %v360_v56 }
 0x111   :  { %639 = vmatprep.subr.mxu1 %v775_v0 }
 0x112   :  { %640 = vmatpush3.msra.mxu1 %v359_v57 }
 0x113   :  { %641 = vmatprep.subr.mxu1 %v775_v0 }
 0x114   :  { %642 = vmatpush3.msra.mxu1 %v358_v58 }
 0x115   :  { %643 = vmatprep.subr.mxu1 %v775_v0 }
 0x116   :  { %644 = vmatpush3.msra.mxu1 %v357_v59 }
 0x117   :  { %645 = vmatprep.subr.mxu1 %v775_v0 }
 0x118   :  { %646 = vmatpush3.msra.mxu1 %v356_v60 }
 0x119   :  { %647 = vmatprep.subr.mxu1 %v775_v0 }
 0x11a   :  { %648 = vmatpush3.msra.mxu1 %v355_v61 }
 0x11b   :  { %649 = vmatprep.subr.mxu1 %v775_v0 }
 0x11c   :  { %650 = vmatpush3.msra.mxu1 %v354_v62 }
 0x11d   :  { %651 = vmatprep.subr.mxu1 %v775_v0 }
 0x11e   :  { %652 = vmatpush3.msra.mxu1 %v353_v63 }
 0x11f   :  { %653 = vmatprep.subr.mxu1 %v775_v0 }
 0x120   :  { %654 = vmatpush3.msra.mxu1 %v352_v6 }
 0x121   :  { %655 = vmatprep.subr.mxu1 %v775_v0 }
 0x122   :  { %656 = vmatpush3.msra.mxu1 %v351_v7 }
 0x123   :  { %657 = vmatprep.subr.mxu1 %v775_v0 }
 0x124   :  { %658 = vmatpush3.msra.mxu1 %v350_v8 }
 0x125   :  { %659 = vmatprep.subr.mxu1 %v775_v0 }
 0x126   :  { %660 = vmatpush3.msra.mxu1 %v349_v9 }
 0x127   :  { %661 = vmatprep.subr.mxu1 %v775_v0 }
 0x128   :  { %662 = vmatpush3.msra.mxu1 %v348_v10 }
 0x129   :  { %663 = vmatprep.subr.mxu1 %v775_v0 }
 0x12a   :  { %664 = vmatpush3.msra.mxu1 %v347_v11 }
 0x12b   :  { %665 = vmatprep.subr.mxu1 %v775_v0 }
 0x12c   :  { %666 = vmatpush3.msra.mxu1 %v346_v12 }
 0x1cd   :  { %v240_v2 = vpop.f32.mrf.mxu1 }
 0x1ce   :  { %v241_v3 = vadd.f32 %v459_v1, %v240_v2 }
 0x1cf   :  { %v599_v4 = vpop.f32.mrf.mxu1 }
 0x1d0   :  { %v244_v5 = vmax.f32 %v241_v3, 0.0 }
 0x1d2   :  { %633 = vmatmul.mubr.f32.vlgmr.msra.gmra.mxu0 %v244_v5 }
 0x292   :  { %v336_v14 = vpop.f32.mrf.mxu0 }
 0x293   :  { %v337_v15 = vadd.f32 %v460_v13, %v336_v14 }
 0x294   :  { %v634_v16 = vpop.f32.mrf.mxu0 }
 0x295   :  { %v340_v17 = vadd.f32 3.0, %v337_v15 }
 0x297   :  { %v341_v18 = vmax.f32 %v340_v17, 0.0 }
 0x299   :  { %v342_v19 = vmin.f32 %v341_v18, 6.0 }
 0x29b   :  { %v343_v20 = vmul.f32 %v342_v19, %v337_v15 }
 0x29d   :  { %v344_v21 = vmul.f32 0.16666667, %v343_v20 }
 0x29f   :  { %668 = vmatmul.mubr.f32.vlgmr.msra.gmra.mxu1 %v344_v21 }
 0x35f   :  { %v436_v23 = vpop.f32.mrf.mxu1 }
 0x360   :  { %v437_v24 = vadd.f32 %v461_v22, %v436_v23 }
 0x361   :  { %v669_v25 = vpop.f32.mrf.mxu1 }
 0x362   :  { %680 = vtanh.f32 %v437_v24 }
 0x36f   :  { %v681_v0 = vpop.eup %680 }
 0x370   :  { %441 = vst [vmem:[#allocation8] sm:$0xff] %v681_v0 }
 0x371   :  { %753 = shalt.err (!%p750_p5)
}
 0x372   :  { %451 = dma.vmem_to_hbm [thread:$0]  %s449_s2, 128, %s885_s3, [#allocation4]  }
 0x373   :  { %766 = dma.done.wait [#allocation4], 128  }
 0x374   :  { %767 = vsyncadd [#allocation4], 4294967168 }
 0x375   :  { %455 = vsyncpa [#allocation3], 1 }
 0x376   :  { %456 = vsyncpa [#allocation6], 1 }
 0x377   :  { %457 = vsyncpa [#allocation4], 1 }

</bundles_post_ra>
